<compile_context>
chip_gen: v7x
topology: tpu7x:2x2x1
jax: 0.10.0
libtpu: 0.0.40
codegen_flags: <defaults>
</compile_context>

<pallas_src>
import functools
import math

import jax
import jax.numpy as jnp
from jax import lax
from jax.experimental import pallas as pl
from jax.experimental.pallas import tpu as pltpu


def _mha_fused_kernel(xq_ref, xkv_ref, wq_ref, bq_ref, wkv_ref, bkv_ref,
                      wo_ref, bo_ref, out_ref, *, num_heads, emb_size):
    # xq_ref:  (1, TQ, E) bf16  query rows for this grid step
    # xkv_ref: (1, N,  E) bf16  full sequence row (for K/V)
    # wq_ref:  (E, E)  bf16     Q weight, scale + (in, out) layout, 1/sqrt(E) pre-folded
    # bq_ref:  (1, E)  f32      Q bias, 1/sqrt(E) pre-folded
    # wkv_ref: (E, 2E) bf16     fused [Wk | Wv]
    # bkv_ref: (1, 2E) f32
    # wo_ref:  (E, E)  bf16     output projection weight
    # bo_ref:  (1, E)  f32
    # out_ref: (1, TQ, E) f32   lane-dense output block (single store per step)
    E = emb_size
    H = num_heads
    D = E // H

    xq = xq_ref[0]                                       # (TQ, E) bf16
    xkv = xkv_ref[0]                                     # (N,  E) bf16
    TQ = xq.shape[0]

    # Projections: bf16 operands, f32 accumulate. Scale & bq already folded into wq/bq.
    q = jnp.dot(xq, wq_ref[...], preferred_element_type=jnp.float32) + bq_ref[0]     # (TQ, E)
    kv = jnp.dot(xkv, wkv_ref[...], preferred_element_type=jnp.float32) + bkv_ref[0]  # (N, 2E)

    q_b = q.astype(jnp.bfloat16)
    k_b = kv[:, 0:E].astype(jnp.bfloat16)
    v_b = kv[:, E:2 * E].astype(jnp.bfloat16)
    wo = wo_ref[...]                                     # (E, E) bf16, loaded once

    acc = jnp.zeros((TQ, E), jnp.float32)

    # Per-head attention; heads are folded into the Wo accumulation (no merged scratch,
    # no masked partial stores). H is small, so a static loop is fine here.
    for h in range(H):
        lo, hi = h * D, (h + 1) * D
        qh = q_b[:, lo:hi]                               # (TQ, D)
        kh = k_b[:, lo:hi]                               # (N,  D)
        vh = v_b[:, lo:hi]                               # (N,  D)

        # energy = qh @ kh^T without an explicit transpose (contract D of both).
        energy = lax.dot_general(
            qh, kh, (((1,), (1,)), ((), ())),
            preferred_element_type=jnp.float32)          # (TQ, N) f32

        # Softmax in f32 (VPU/EUP); normalization via EUP reciprocal + one Newton step
        # applied to the (TQ, D) context, not the (TQ, N) probability tile.
        energy = energy - jnp.max(energy, axis=-1, keepdims=True)
        p = jnp.exp(energy)                              # (TQ, N)
        s = jnp.sum(p, axis=-1, keepdims=True)           # (TQ, 1)
        r = pl.reciprocal(s, approx=True)
        r = r * (2.0 - s * r)

        ctx = jnp.dot(p.astype(jnp.bfloat16), vh,
                      preferred_element_type=jnp.float32) * r          # (TQ, D) f32

        # Fold this head into the output projection: rows lo:hi of Wo (sublane slice).
        acc = acc + jnp.dot(ctx.astype(jnp.bfloat16), wo[lo:hi, :],
                            preferred_element_type=jnp.float32)        # (TQ, E)

    # Single lane-dense store per grid step.
    # NOTE: in real deployments E should be a multiple of 128 to keep this store unmasked.
    out_ref[0] = (acc + bo_ref[0]).astype(out_ref.dtype)


def pack_mha_params(params, emb_size, param_dtype=jnp.bfloat16):
    """One-time parameter packing (call OUTSIDE the forward path).

    Folds the 1/sqrt(emb_size) attention scale into the Q weight/bias and fuses the
    K/V weights into a single (E, 2E) slab; matmul weights are cast to bf16, biases
    stay f32 (they are added to f32 accumulators).
    """
    E = emb_size
    inv_scale = E ** -0.5                      # torch scales by sqrt(emb_size), not sqrt(head_dim)
    return dict(
        wq=(params["wq"] * inv_scale).astype(param_dtype),                       # (E, E)
        bq=(params["bq"] * inv_scale).astype(jnp.float32).reshape(1, E),         # (1, E)
        wkv=jnp.concatenate([params["wk"], params["wv"]], axis=1).astype(param_dtype),  # (E, 2E)
        bkv=jnp.concatenate([params["bk"], params["bv"]]).astype(jnp.float32).reshape(1, 2 * E),
        wo=params["wo"].astype(param_dtype),                                     # (E, E)
        bo=params["bo"].astype(jnp.float32).reshape(1, E),                       # (1, E)
    )


def multi_head_attention(x, packed, *, num_heads, q_tile=None):
    """x: (B, N, E) float32. packed: output of pack_mha_params. Returns (B, N, E) f32."""
    B, N, E = x.shape
    assert E % num_heads == 0, "emb_size must be divisible by num_heads"

    if q_tile is None:
        q_tile = N if N <= 128 else 128
    assert N % q_tile == 0, "sequence length must be divisible by q_tile"  # TODO(synk): ragged N
    nq = N // q_tile

    # In a real model activations would already be bf16; cast once here.
    x_bf = x.astype(jnp.bfloat16)

    kernel = functools.partial(_mha_fused_kernel, num_heads=num_heads, emb_size=E)

    return pl.pallas_call(
        kernel,
        out_shape=jax.ShapeDtypeStruct((B, N, E), jnp.float32),
        grid=(B, nq),
        in_specs=[
            pl.BlockSpec((1, q_tile, E), lambda b, qi: (b, qi, 0)),   # x (query tile)
            pl.BlockSpec((1, N, E), lambda b, qi: (b, 0, 0)),         # x (full row for K/V)
            pl.BlockSpec((E, E), lambda b, qi: (0, 0)),               # Wq (scaled)
            pl.BlockSpec((1, E), lambda b, qi: (0, 0)),               # bq (scaled)
            pl.BlockSpec((E, 2 * E), lambda b, qi: (0, 0)),           # [Wk | Wv]
            pl.BlockSpec((1, 2 * E), lambda b, qi: (0, 0)),           # [bk | bv]
            pl.BlockSpec((E, E), lambda b, qi: (0, 0)),               # Wo
            pl.BlockSpec((1, E), lambda b, qi: (0, 0)),               # bo
        ],
        out_specs=pl.BlockSpec((1, q_tile, E), lambda b, qi: (b, qi, 0)),
        compiler_params=pltpu.CompilerParams(
            dimension_semantics=("parallel", "parallel"),   # batch & q-tiles independent
            vmem_limit_bytes=64 * 1024 * 1024),
    )(x_bf, x_bf, packed["wq"], packed["bq"], packed["wkv"], packed["bkv"],
      packed["wo"], packed["bo"])


def _reference(x, params, num_heads):
    """Pure-JAX f32 reference mirroring the torch forward (mask=None, eval mode)."""
    B, N, E = x.shape
    H = num_heads
    D = E // H
    q = x @ params["wq"] + params["bq"]
    k = x @ params["wk"] + params["bk"]
    v = x @ params["wv"] + params["bv"]

    def split(t):
        return t.reshape(B, N, H, D).transpose(0, 2, 1, 3)     # b h n d

    q, k, v = split(q), split(k), split(v)
    energy = jnp.einsum("bhqd,bhkd->bhqk", q, k)
    att = jax.nn.softmax(energy / (E ** 0.5), axis=-1)
    out = jnp.einsum("bhal,bhlv->bhav", att, v)
    out = out.transpose(0, 2, 1, 3).reshape(B, N, E)
    return out @ params["wo"] + params["bo"]


if __name__ == "__main__":
    B, N, E, H = 2, 8, 32, 4
    dropout = 0.1  # unused at inference

    key = jax.random.PRNGKey(0)
    kx, kq, kk, kv, ko, kbq, kbk, kbv, kbo = jax.random.split(key, 9)

    x = jax.random.normal(kx, (B, N, E), dtype=jnp.float32)

    def linear_init(kw, kb):
        # deterministic synthetic init; layout is (in, out) so y = x @ W + b
        bound = 1.0 / math.sqrt(E)
        w = jax.random.uniform(kw, (E, E), jnp.float32, -bound, bound)
        b = jax.random.uniform(kb, (E,), jnp.float32, -bound, bound)
        return w, b

    wq, bq = linear_init(kq, kbq)
    wk, bk = linear_init(kk, kbk)
    wv, bv = linear_init(kv, kbv)
    wo, bo = linear_init(ko, kbo)
    params = dict(wq=wq, bq=bq, wk=wk, bk=bk, wv=wv, bv=bv, wo=wo, bo=bo)

    # Pack once (outside the forward path), then run the fused kernel.
    packed = pack_mha_params(params, E)
    out = multi_head_attention(x, packed, num_heads=H)
    out = jax.block_until_ready(out)

    # Mixed-precision comparison: the reference sees bf16-rounded activations/weights
    # (what the kernel consumes) but does all math in f32; the remaining difference is
    # the kernel's bf16 intermediates, so a bf16-appropriate tolerance is used.
    def _round_bf16(a):
        return a.astype(jnp.bfloat16).astype(jnp.float32)

    params_r = dict(params)
    for name in ("wq", "wk", "wv", "wo"):
        params_r[name] = _round_bf16(params[name])
    ref = _reference(_round_bf16(x), params_r, H)

    assert out.shape == (B, N, E)
    assert jnp.allclose(out, ref, atol=2e-2, rtol=2e-2), "mismatch vs reference"

    print("KERNEL_OK")
</pallas_src>

<mosaic_0001>
module attributes {stable_mosaic.version = 11 : i64} {
  func.func @_mha_fused_kernel(%arg0: i32, %arg1: i32, %arg2: memref<1x8x32xbf16, #tpu.memory_space<vmem>>, %arg3: memref<1x8x32xbf16, #tpu.memory_space<vmem>>, %arg4: memref<32x32xbf16, #tpu.memory_space<vmem>>, %arg5: memref<1x32xf32, #tpu.memory_space<vmem>>, %arg6: memref<32x64xbf16, #tpu.memory_space<vmem>>, %arg7: memref<1x64xf32, #tpu.memory_space<vmem>>, %arg8: memref<32x32xbf16, #tpu.memory_space<vmem>>, %arg9: memref<1x32xf32, #tpu.memory_space<vmem>>, %arg10: memref<1x8x32xf32, #tpu.memory_space<vmem>>) attributes {dimension_semantics = [#tpu.dimension_semantics<parallel>, #tpu.dimension_semantics<parallel>], iteration_bounds = array<i64: 2, 1>, scalar_prefetch = 0 : i64, scratch_operands = 0 : i64, tpu.core_type = #tpu.core_type<tc>, window_params = [{transform_indices = @transform_0, window_bounds = array<i64: 1, 8, 32>}, {transform_indices = @transform_1, window_bounds = array<i64: 1, 8, 32>}, {pipeline_mode = #tpu.pipeline_mode<synchronous>, transform_indices = @transform_2, window_bounds = array<i64: 32, 32>}, {pipeline_mode = #tpu.pipeline_mode<synchronous>, transform_indices = @transform_3, window_bounds = array<i64: 1, 32>}, {pipeline_mode = #tpu.pipeline_mode<synchronous>, transform_indices = @transform_4, window_bounds = array<i64: 32, 64>}, {pipeline_mode = #tpu.pipeline_mode<synchronous>, transform_indices = @transform_5, window_bounds = array<i64: 1, 64>}, {pipeline_mode = #tpu.pipeline_mode<synchronous>, transform_indices = @transform_6, window_bounds = array<i64: 32, 32>}, {pipeline_mode = #tpu.pipeline_mode<synchronous>, transform_indices = @transform_7, window_bounds = array<i64: 1, 32>}, {transform_indices = @transform_8, window_bounds = array<i64: 1, 8, 32>}]} {
    %c0 = arith.constant 0 : index
    %c0_0 = arith.constant 0 : index
    %c0_1 = arith.constant 0 : index
    %0 = vector.load %arg2[%c0, %c0_0, %c0_1] : memref<1x8x32xbf16, #tpu.memory_space<vmem>>, vector<1x8x32xbf16>
    %1 = vector.shape_cast %0 : vector<1x8x32xbf16> to vector<8x32xbf16>
    %c0_2 = arith.constant 0 : index
    %c0_3 = arith.constant 0 : index
    %c0_4 = arith.constant 0 : index
    %2 = vector.load %arg3[%c0_2, %c0_3, %c0_4] : memref<1x8x32xbf16, #tpu.memory_space<vmem>>, vector<1x8x32xbf16>
    %3 = vector.shape_cast %2 : vector<1x8x32xbf16> to vector<8x32xbf16>
    %c0_5 = arith.constant 0 : index
    %c0_6 = arith.constant 0 : index
    %4 = vector.load %arg4[%c0_5, %c0_6] : memref<32x32xbf16, #tpu.memory_space<vmem>>, vector<32x32xbf16>
    %cst = arith.constant dense<0.000000e+00> : vector<8x32xf32>
    %5 = tpu.matmul %1, %4, %cst {dimension_numbers = #tpu.dot_dimension_numbers<[1], [0], [0], [1], [0, 0, 1, 1], [], []>} : vector<8x32xbf16>, vector<32x32xbf16>, vector<8x32xf32> -> vector<8x32xf32>
    %c0_7 = arith.constant 0 : index
    %c0_8 = arith.constant 0 : index
    %6 = vector.load %arg5[%c0_7, %c0_8] : memref<1x32xf32, #tpu.memory_space<vmem>>, vector<1x32xf32>
    %7 = vector.shape_cast %6 : vector<1x32xf32> to vector<32xf32>
    %8 = vector.shape_cast %7 : vector<32xf32> to vector<1x32xf32>
    %9 = vector.broadcast %8 : vector<1x32xf32> to vector<8x32xf32>
    %10 = arith.addf %5, %9 : vector<8x32xf32>
    %c0_9 = arith.constant 0 : index
    %c0_10 = arith.constant 0 : index
    %11 = vector.load %arg6[%c0_9, %c0_10] : memref<32x64xbf16, #tpu.memory_space<vmem>>, vector<32x64xbf16>
    %cst_11 = arith.constant dense<0.000000e+00> : vector<8x64xf32>
    %12 = tpu.matmul %3, %11, %cst_11 {dimension_numbers = #tpu.dot_dimension_numbers<[1], [0], [0], [1], [0, 0, 1, 1], [], []>} : vector<8x32xbf16>, vector<32x64xbf16>, vector<8x64xf32> -> vector<8x64xf32>
    %c0_12 = arith.constant 0 : index
    %c0_13 = arith.constant 0 : index
    %13 = vector.load %arg7[%c0_12, %c0_13] : memref<1x64xf32, #tpu.memory_space<vmem>>, vector<1x64xf32>
    %14 = vector.shape_cast %13 : vector<1x64xf32> to vector<64xf32>
    %15 = vector.shape_cast %14 : vector<64xf32> to vector<1x64xf32>
    %16 = vector.broadcast %15 : vector<1x64xf32> to vector<8x64xf32>
    %17 = arith.addf %12, %16 : vector<8x64xf32>
    %18 = arith.truncf %10 : vector<8x32xf32> to vector<8x32xbf16>
    %19 = vector.extract_strided_slice %17 {offsets = [0, 0], sizes = [8, 32], strides = [1, 1]} : vector<8x64xf32> to vector<8x32xf32>
    %20 = arith.truncf %19 : vector<8x32xf32> to vector<8x32xbf16>
    %21 = vector.extract_strided_slice %17 {offsets = [0, 32], sizes = [8, 32], strides = [1, 1]} : vector<8x64xf32> to vector<8x32xf32>
    %22 = arith.truncf %21 : vector<8x32xf32> to vector<8x32xbf16>
    %c0_14 = arith.constant 0 : index
    %c0_15 = arith.constant 0 : index
    %23 = vector.load %arg8[%c0_14, %c0_15] : memref<32x32xbf16, #tpu.memory_space<vmem>>, vector<32x32xbf16>
    %cst_16 = arith.constant 0.000000e+00 : f32
    %24 = vector.broadcast %cst_16 : f32 to vector<8x32xf32>
    %25 = vector.extract_strided_slice %18 {offsets = [0, 0], sizes = [8, 8], strides = [1, 1]} : vector<8x32xbf16> to vector<8x8xbf16>
    %26 = vector.extract_strided_slice %20 {offsets = [0, 0], sizes = [8, 8], strides = [1, 1]} : vector<8x32xbf16> to vector<8x8xbf16>
    %27 = vector.extract_strided_slice %22 {offsets = [0, 0], sizes = [8, 8], strides = [1, 1]} : vector<8x32xbf16> to vector<8x8xbf16>
    %cst_17 = arith.constant dense<0.000000e+00> : vector<8x8xf32>
    %28 = tpu.matmul %25, %26, %cst_17 {dimension_numbers = #tpu.dot_dimension_numbers<[1], [1], [0], [0], [0, 0, 1, 0], [], []>} : vector<8x8xbf16>, vector<8x8xbf16>, vector<8x8xf32> -> vector<8x8xf32>
    %cst_18 = arith.constant dense<0xFF800000> : vector<8xf32>
    %29 = vector.multi_reduction <maximumf>, %28, %cst_18 [1] : vector<8x8xf32> to vector<8xf32>
    %30 = vector.shape_cast %29 : vector<8xf32> to vector<8x1xf32>
    %31 = vector.broadcast %30 : vector<8x1xf32> to vector<8x8xf32>
    %32 = arith.subf %28, %31 : vector<8x8xf32>
    %33 = math.exp %32 : vector<8x8xf32>
    %cst_19 = arith.constant dense<0.000000e+00> : vector<8xf32>
    %34 = vector.multi_reduction <add>, %33, %cst_19 [1] : vector<8x8xf32> to vector<8xf32>
    %35 = vector.shape_cast %34 : vector<8xf32> to vector<8x1xf32>
    %36 = tpu.reciprocal %35 {approx = true} : vector<8x1xf32> -> vector<8x1xf32>
    %37 = arith.mulf %35, %36 : vector<8x1xf32>
    %cst_20 = arith.constant 2.000000e+00 : f32
    %38 = vector.broadcast %cst_20 : f32 to vector<8x1xf32>
    %39 = arith.subf %38, %37 : vector<8x1xf32>
    %40 = arith.mulf %36, %39 : vector<8x1xf32>
    %41 = arith.truncf %33 : vector<8x8xf32> to vector<8x8xbf16>
    %cst_21 = arith.constant dense<0.000000e+00> : vector<8x8xf32>
    %42 = tpu.matmul %41, %27, %cst_21 {dimension_numbers = #tpu.dot_dimension_numbers<[1], [0], [0], [1], [0, 0, 1, 1], [], []>} : vector<8x8xbf16>, vector<8x8xbf16>, vector<8x8xf32> -> vector<8x8xf32>
    %43 = vector.broadcast %40 : vector<8x1xf32> to vector<8x8xf32>
    %44 = arith.mulf %42, %43 : vector<8x8xf32>
    %45 = arith.truncf %44 : vector<8x8xf32> to vector<8x8xbf16>
    %46 = vector.extract_strided_slice %23 {offsets = [0, 0], sizes = [8, 32], strides = [1, 1]} : vector<32x32xbf16> to vector<8x32xbf16>
    %cst_22 = arith.constant dense<0.000000e+00> : vector<8x32xf32>
    %47 = tpu.matmul %45, %46, %cst_22 {dimension_numbers = #tpu.dot_dimension_numbers<[1], [0], [0], [1], [0, 0, 1, 1], [], []>} : vector<8x8xbf16>, vector<8x32xbf16>, vector<8x32xf32> -> vector<8x32xf32>
    %48 = arith.addf %24, %47 : vector<8x32xf32>
    %49 = vector.extract_strided_slice %18 {offsets = [0, 8], sizes = [8, 8], strides = [1, 1]} : vector<8x32xbf16> to vector<8x8xbf16>
    %50 = vector.extract_strided_slice %20 {offsets = [0, 8], sizes = [8, 8], strides = [1, 1]} : vector<8x32xbf16> to vector<8x8xbf16>
    %51 = vector.extract_strided_slice %22 {offsets = [0, 8], sizes = [8, 8], strides = [1, 1]} : vector<8x32xbf16> to vector<8x8xbf16>
    %cst_23 = arith.constant dense<0.000000e+00> : vector<8x8xf32>
    %52 = tpu.matmul %49, %50, %cst_23 {dimension_numbers = #tpu.dot_dimension_numbers<[1], [1], [0], [0], [0, 0, 1, 0], [], []>} : vector<8x8xbf16>, vector<8x8xbf16>, vector<8x8xf32> -> vector<8x8xf32>
    %cst_24 = arith.constant dense<0xFF800000> : vector<8xf32>
    %53 = vector.multi_reduction <maximumf>, %52, %cst_24 [1] : vector<8x8xf32> to vector<8xf32>
    %54 = vector.shape_cast %53 : vector<8xf32> to vector<8x1xf32>
    %55 = vector.broadcast %54 : vector<8x1xf32> to vector<8x8xf32>
    %56 = arith.subf %52, %55 : vector<8x8xf32>
    %57 = math.exp %56 : vector<8x8xf32>
    %cst_25 = arith.constant dense<0.000000e+00> : vector<8xf32>
    %58 = vector.multi_reduction <add>, %57, %cst_25 [1] : vector<8x8xf32> to vector<8xf32>
    %59 = vector.shape_cast %58 : vector<8xf32> to vector<8x1xf32>
    %60 = tpu.reciprocal %59 {approx = true} : vector<8x1xf32> -> vector<8x1xf32>
    %61 = arith.mulf %59, %60 : vector<8x1xf32>
    %cst_26 = arith.constant 2.000000e+00 : f32
    %62 = vector.broadcast %cst_26 : f32 to vector<8x1xf32>
    %63 = arith.subf %62, %61 : vector<8x1xf32>
    %64 = arith.mulf %60, %63 : vector<8x1xf32>
    %65 = arith.truncf %57 : vector<8x8xf32> to vector<8x8xbf16>
    %cst_27 = arith.constant dense<0.000000e+00> : vector<8x8xf32>
    %66 = tpu.matmul %65, %51, %cst_27 {dimension_numbers = #tpu.dot_dimension_numbers<[1], [0], [0], [1], [0, 0, 1, 1], [], []>} : vector<8x8xbf16>, vector<8x8xbf16>, vector<8x8xf32> -> vector<8x8xf32>
    %67 = vector.broadcast %64 : vector<8x1xf32> to vector<8x8xf32>
    %68 = arith.mulf %66, %67 : vector<8x8xf32>
    %69 = arith.truncf %68 : vector<8x8xf32> to vector<8x8xbf16>
    %70 = vector.extract_strided_slice %23 {offsets = [8, 0], sizes = [8, 32], strides = [1, 1]} : vector<32x32xbf16> to vector<8x32xbf16>
    %cst_28 = arith.constant dense<0.000000e+00> : vector<8x32xf32>
    %71 = tpu.matmul %69, %70, %cst_28 {dimension_numbers = #tpu.dot_dimension_numbers<[1], [0], [0], [1], [0, 0, 1, 1], [], []>} : vector<8x8xbf16>, vector<8x32xbf16>, vector<8x32xf32> -> vector<8x32xf32>
    %72 = arith.addf %48, %71 : vector<8x32xf32>
    %73 = vector.extract_strided_slice %18 {offsets = [0, 16], sizes = [8, 8], strides = [1, 1]} : vector<8x32xbf16> to vector<8x8xbf16>
    %74 = vector.extract_strided_slice %20 {offsets = [0, 16], sizes = [8, 8], strides = [1, 1]} : vector<8x32xbf16> to vector<8x8xbf16>
    %75 = vector.extract_strided_slice %22 {offsets = [0, 16], sizes = [8, 8], strides = [1, 1]} : vector<8x32xbf16> to vector<8x8xbf16>
    %cst_29 = arith.constant dense<0.000000e+00> : vector<8x8xf32>
    %76 = tpu.matmul %73, %74, %cst_29 {dimension_numbers = #tpu.dot_dimension_numbers<[1], [1], [0], [0], [0, 0, 1, 0], [], []>} : vector<8x8xbf16>, vector<8x8xbf16>, vector<8x8xf32> -> vector<8x8xf32>
    %cst_30 = arith.constant dense<0xFF800000> : vector<8xf32>
    %77 = vector.multi_reduction <maximumf>, %76, %cst_30 [1] : vector<8x8xf32> to vector<8xf32>
    %78 = vector.shape_cast %77 : vector<8xf32> to vector<8x1xf32>
    %79 = vector.broadcast %78 : vector<8x1xf32> to vector<8x8xf32>
    %80 = arith.subf %76, %79 : vector<8x8xf32>
    %81 = math.exp %80 : vector<8x8xf32>
    %cst_31 = arith.constant dense<0.000000e+00> : vector<8xf32>
    %82 = vector.multi_reduction <add>, %81, %cst_31 [1] : vector<8x8xf32> to vector<8xf32>
    %83 = vector.shape_cast %82 : vector<8xf32> to vector<8x1xf32>
    %84 = tpu.reciprocal %83 {approx = true} : vector<8x1xf32> -> vector<8x1xf32>
    %85 = arith.mulf %83, %84 : vector<8x1xf32>
    %cst_32 = arith.constant 2.000000e+00 : f32
    %86 = vector.broadcast %cst_32 : f32 to vector<8x1xf32>
    %87 = arith.subf %86, %85 : vector<8x1xf32>
    %88 = arith.mulf %84, %87 : vector<8x1xf32>
    %89 = arith.truncf %81 : vector<8x8xf32> to vector<8x8xbf16>
    %cst_33 = arith.constant dense<0.000000e+00> : vector<8x8xf32>
    %90 = tpu.matmul %89, %75, %cst_33 {dimension_numbers = #tpu.dot_dimension_numbers<[1], [0], [0], [1], [0, 0, 1, 1], [], []>} : vector<8x8xbf16>, vector<8x8xbf16>, vector<8x8xf32> -> vector<8x8xf32>
    %91 = vector.broadcast %88 : vector<8x1xf32> to vector<8x8xf32>
    %92 = arith.mulf %90, %91 : vector<8x8xf32>
    %93 = arith.truncf %92 : vector<8x8xf32> to vector<8x8xbf16>
    %94 = vector.extract_strided_slice %23 {offsets = [16, 0], sizes = [8, 32], strides = [1, 1]} : vector<32x32xbf16> to vector<8x32xbf16>
    %cst_34 = arith.constant dense<0.000000e+00> : vector<8x32xf32>
    %95 = tpu.matmul %93, %94, %cst_34 {dimension_numbers = #tpu.dot_dimension_numbers<[1], [0], [0], [1], [0, 0, 1, 1], [], []>} : vector<8x8xbf16>, vector<8x32xbf16>, vector<8x32xf32> -> vector<8x32xf32>
    %96 = arith.addf %72, %95 : vector<8x32xf32>
    %97 = vector.extract_strided_slice %18 {offsets = [0, 24], sizes = [8, 8], strides = [1, 1]} : vector<8x32xbf16> to vector<8x8xbf16>
    %98 = vector.extract_strided_slice %20 {offsets = [0, 24], sizes = [8, 8], strides = [1, 1]} : vector<8x32xbf16> to vector<8x8xbf16>
    %99 = vector.extract_strided_slice %22 {offsets = [0, 24], sizes = [8, 8], strides = [1, 1]} : vector<8x32xbf16> to vector<8x8xbf16>
    %cst_35 = arith.constant dense<0.000000e+00> : vector<8x8xf32>
    %100 = tpu.matmul %97, %98, %cst_35 {dimension_numbers = #tpu.dot_dimension_numbers<[1], [1], [0], [0], [0, 0, 1, 0], [], []>} : vector<8x8xbf16>, vector<8x8xbf16>, vector<8x8xf32> -> vector<8x8xf32>
    %cst_36 = arith.constant dense<0xFF800000> : vector<8xf32>
    %101 = vector.multi_reduction <maximumf>, %100, %cst_36 [1] : vector<8x8xf32> to vector<8xf32>
    %102 = vector.shape_cast %101 : vector<8xf32> to vector<8x1xf32>
    %103 = vector.broadcast %102 : vector<8x1xf32> to vector<8x8xf32>
    %104 = arith.subf %100, %103 : vector<8x8xf32>
    %105 = math.exp %104 : vector<8x8xf32>
    %cst_37 = arith.constant dense<0.000000e+00> : vector<8xf32>
    %106 = vector.multi_reduction <add>, %105, %cst_37 [1] : vector<8x8xf32> to vector<8xf32>
    %107 = vector.shape_cast %106 : vector<8xf32> to vector<8x1xf32>
    %108 = tpu.reciprocal %107 {approx = true} : vector<8x1xf32> -> vector<8x1xf32>
    %109 = arith.mulf %107, %108 : vector<8x1xf32>
    %cst_38 = arith.constant 2.000000e+00 : f32
    %110 = vector.broadcast %cst_38 : f32 to vector<8x1xf32>
    %111 = arith.subf %110, %109 : vector<8x1xf32>
    %112 = arith.mulf %108, %111 : vector<8x1xf32>
    %113 = arith.truncf %105 : vector<8x8xf32> to vector<8x8xbf16>
    %cst_39 = arith.constant dense<0.000000e+00> : vector<8x8xf32>
    %114 = tpu.matmul %113, %99, %cst_39 {dimension_numbers = #tpu.dot_dimension_numbers<[1], [0], [0], [1], [0, 0, 1, 1], [], []>} : vector<8x8xbf16>, vector<8x8xbf16>, vector<8x8xf32> -> vector<8x8xf32>
    %115 = vector.broadcast %112 : vector<8x1xf32> to vector<8x8xf32>
    %116 = arith.mulf %114, %115 : vector<8x8xf32>
    %117 = arith.truncf %116 : vector<8x8xf32> to vector<8x8xbf16>
    %118 = vector.extract_strided_slice %23 {offsets = [24, 0], sizes = [8, 32], strides = [1, 1]} : vector<32x32xbf16> to vector<8x32xbf16>
    %cst_40 = arith.constant dense<0.000000e+00> : vector<8x32xf32>
    %119 = tpu.matmul %117, %118, %cst_40 {dimension_numbers = #tpu.dot_dimension_numbers<[1], [0], [0], [1], [0, 0, 1, 1], [], []>} : vector<8x8xbf16>, vector<8x32xbf16>, vector<8x32xf32> -> vector<8x32xf32>
    %120 = arith.addf %96, %119 : vector<8x32xf32>
    %c0_41 = arith.constant 0 : index
    %c0_42 = arith.constant 0 : index
    %121 = vector.load %arg9[%c0_41, %c0_42] : memref<1x32xf32, #tpu.memory_space<vmem>>, vector<1x32xf32>
    %122 = vector.shape_cast %121 : vector<1x32xf32> to vector<32xf32>
    %123 = vector.shape_cast %122 : vector<32xf32> to vector<1x32xf32>
    %124 = vector.broadcast %123 : vector<1x32xf32> to vector<8x32xf32>
    %125 = arith.addf %120, %124 : vector<8x32xf32>
    %c0_43 = arith.constant 0 : index
    %c0_44 = arith.constant 0 : index
    %c0_45 = arith.constant 0 : index
    %126 = vector.load %arg10[%c0_43, %c0_44, %c0_45] : memref<1x8x32xf32, #tpu.memory_space<vmem>>, vector<1x8x32xf32>
    %127 = vector.shape_cast %126 : vector<1x8x32xf32> to vector<8x32xf32>
    %128 = vector.shape_cast %125 : vector<8x32xf32> to vector<1x8x32xf32>
    tpu.vector_store %arg10[%c0_43, %c0_44, %c0_45], %128 {strides = array<i32>} : memref<1x8x32xf32, #tpu.memory_space<vmem>>, vector<1x8x32xf32>,
    return
  }
  func.func @transform_0(%arg0: i32, %arg1: i32) -> (i32, i32, i32) {
    %c0_i32 = arith.constant 0 : i32
    %c0_i32_0 = arith.constant 0 : i32
    return %arg0, %arg1, %c0_i32 : i32, i32, i32
  }
  func.func @transform_1(%arg0: i32, %arg1: i32) -> (i32, i32, i32) {
    %c0_i32 = arith.constant 0 : i32
    %c0_i32_0 = arith.constant 0 : i32
    %c0_i32_1 = arith.constant 0 : i32
    return %arg0, %c0_i32, %c0_i32_0 : i32, i32, i32
  }
  func.func @transform_2(%arg0: i32, %arg1: i32) -> (i32, i32) {
    %c0_i32 = arith.constant 0 : i32
    %c0_i32_0 = arith.constant 0 : i32
    %c0_i32_1 = arith.constant 0 : i32
    return %c0_i32, %c0_i32_0 : i32, i32
  }
  func.func @transform_3(%arg0: i32, %arg1: i32) -> (i32, i32) {
    %c0_i32 = arith.constant 0 : i32
    %c0_i32_0 = arith.constant 0 : i32
    %c0_i32_1 = arith.constant 0 : i32
    return %c0_i32, %c0_i32_0 : i32, i32
  }
  func.func @transform_4(%arg0: i32, %arg1: i32) -> (i32, i32) {
    %c0_i32 = arith.constant 0 : i32
    %c0_i32_0 = arith.constant 0 : i32
    %c0_i32_1 = arith.constant 0 : i32
    return %c0_i32, %c0_i32_0 : i32, i32
  }
  func.func @transform_5(%arg0: i32, %arg1: i32) -> (i32, i32) {
    %c0_i32 = arith.constant 0 : i32
    %c0_i32_0 = arith.constant 0 : i32
    %c0_i32_1 = arith.constant 0 : i32
    return %c0_i32, %c0_i32_0 : i32, i32
  }
  func.func @transform_6(%arg0: i32, %arg1: i32) -> (i32, i32) {
    %c0_i32 = arith.constant 0 : i32
    %c0_i32_0 = arith.constant 0 : i32
    %c0_i32_1 = arith.constant 0 : i32
    return %c0_i32, %c0_i32_0 : i32, i32
  }
  func.func @transform_7(%arg0: i32, %arg1: i32) -> (i32, i32) {
    %c0_i32 = arith.constant 0 : i32
    %c0_i32_0 = arith.constant 0 : i32
    %c0_i32_1 = arith.constant 0 : i32
    return %c0_i32, %c0_i32_0 : i32, i32
  }
  func.func @transform_8(%arg0: i32, %arg1: i32) -> (i32, i32, i32) {
    %c0_i32 = arith.constant 0 : i32
    %c0_i32_0 = arith.constant 0 : i32
    return %arg0, %arg1, %c0_i32 : i32, i32, i32
  }
}

</mosaic_0001>

<bundles_post_ra>
// kernel: tpu_custom_call.1
= control target key start
LH: loop header
LB: loop body
LE: loop exit
PB: predicated region body
PF: predicated region fallthrough
CT: control target
= control target key end

     0   :  { %s2624_s0 = inlined_call_operand.hbm [shape: bf16[2,8,32], index: 0, kind: input, shape index: {}]   ;;  %s2625_s1 = inlined_call_operand.hbm [shape: bf16[2,8,32], index: 1, kind: input, shape index: {}]   ;;  %s2626_s2 = inlined_call_operand.hbm [shape: bf16[32,32], index: 2, kind: input, shape index: {}]   ;;  %s2627_s3 = inlined_call_operand.hbm [shape: f32[1,32], index: 3, kind: input, shape index: {}]   ;;  %s2628_s4 = inlined_call_operand.hbm [shape: bf16[32,64], index: 4, kind: input, shape index: {}]   ;;  %s2629_s5 = inlined_call_operand.hbm [shape: f32[1,64], index: 5, kind: input, shape index: {}]   ;;  %s2630_s6 = inlined_call_operand.hbm [shape: bf16[32,32], index: 6, kind: input, shape index: {}]   ;;  %s2631_s7 = inlined_call_operand.hbm [shape: f32[1,32], index: 7, kind: input, shape index: {}]   ;;  %s2632_s8 = inlined_call_operand.hbm [shape: f32[2,8,32], index: 8, kind: output, shape index: {}]  }
   0x1   :  { %2640 = sst [smem:[#allocation25_spill]] %s2626_s2 }
   0x2   :  { %2641 = sst [smem:[#allocation26_spill]] %s2627_s3 }
   0x3   :  { %2642 = sst [smem:[#allocation27_spill]] %s2628_s4 }
   0x4   :  { %2643 = sst [smem:[#allocation28_spill]] %s2629_s5 }
   0x5   :  { %2644 = sst [smem:[#allocation29_spill]] %s2630_s6 }
   0x6   :  { %2645 = sst [smem:[#allocation30_spill]] %s2632_s8 }
   0x7   :  { %13 = vsyncpa [#allocation3], 0 }
   0x8   :  { %15 = vsyncpa [#allocation3 + $0x1], 0 }
   0x9   :  { %16 = vsyncpa [#allocation6], 0 }
   0xa   :  { %18 = vsyncpa [#allocation6 + $0x1], 0 }
   0xb   :  { %19 = vsyncpa [#allocation9], 0 }
   0xc   :  { %20 = vsyncpa [#allocation12], 0 }
   0xd   :  { %21 = vsyncpa [#allocation15], 0 }
   0xe   :  { %22 = vsyncpa [#allocation4], 0 }
   0xf   :  { %24 = vsyncpa [#allocation4 + $0x1], 0  ;;  %s2147_s27 = smov 0   ;;  %s2149_s28 = smov 0  }
  0x10   :  { %s2151_s29 = smov 0   ;;  %s2153_s30 = smov 0  }
  0x11   :  { %s2155_s9 = smov 0   ;;  %s2157_s10 = smov 0  }
  0x12 LB: > { %2646 = sst [smem:[#allocation24_spill]] %s2072_s30  ;;  %s2178_s11 = sadd.s32 4294967295, %s2080_s10   ;;  %s2080_s10 = sphi %s2157_s10, %s30_s10   ;;  %s2076_s9 = sphi %s2155_s9, %s2681_s9   ;;  %s2072_s30 = sphi %s2153_s30, %s2680_s30   ;;  %s2068_s29 = sphi %s2151_s29, %s2679_s29   ;;  %s2064_s28 = sphi %s2149_s28, %s2678_s28   ;;  %s2060_s27 = sphi %s2147_s27, %s2677_s27  }
  0x13   : > { %p1426_p0 = scmp.ge.s32.totalorder %s2080_s10, 1  ;;  %p2634_p1 = scmp.eq.s32.totalorder %s2178_s11, 0 }
  0x14   : > { %p255_p2 = scmp.lt.s32.totalorder %s2080_s10, 3  ;;  %s2082_s13 = smov [#allocation7]  }
  0x15   : > { %s267_s14 = sshll.u32 %s2082_s13, 4  ;;  %s2083_s16 = smov [#allocation8]   ;;  %s2187_s14 = int_to_ptr.vmem [resolvable:$true] %s267_s14 }
  0x16   : > { %p2183_p3 = pnand %p1426_p0, %p255_p2  ;;  %s281_s17 = sshll.u32 %s2083_s16, 4  ;;  %s2198_s17 = int_to_ptr.vmem [resolvable:$true] %s281_s17 }
  0x17   : > { %s2084_s18 = smov [#allocation11]   ;;  %s2649_s2 = sld [smem:[#allocation25_spill]] }
  0x18   : > { %s2647_s12 = scalar_select %p2183_p3, 1, 0 }
  0x19   : > { %p1621_p4 = pneg %p2183_p3  ;;  %s2200_s19 = sshll.u32 %s2084_s18, 4  ;;  %s306_s19 = int_to_ptr.vmem [resolvable:$true] %s2200_s19 }
  0x1b   : > { %p2194_p6 = pnand %p1621_p4, %p2634_p1 }
  0x1d   : > { %s1750_s22 = scalar_lea.hbm %s2649_s2, 256  ;;  %p2210_p8 = pneg %p2194_p6 }
  0x1e   : > { %p1751_p7 = scmp.ne.s32.totalorder %s2649_s2, %s1750_s22  ;;  %p1757_p11 = scmp.lt.u32.totalorder %s1750_s22, %s2649_s2 }
  0x20   : > { %p1753_p9 = pnand %p2210_p8, %p1751_p7 }
  0x22   : > { %p1754_p10 = pneg %p1753_p9 }
  0x24   : > { %p1759_p12 = pnand %p1757_p11, %p1754_p10 }
  0x26   : > { %1762 = shalt.err (!%p1759_p12)
}
  0x27   : > { %s1763_s16 = scalar_lea.vmem %s2187_s14, 256  ;;  %p1771_p4 = scmp.lt.s32.totalorder %s2187_s14, %s2187_s14 }
  0x28   : > { %p1764_p13 = scmp.ne.s32.totalorder %s2187_s14, %s1763_s16  ;;  %p1772_p5 = scmp.lt.s32.totalorder %s1763_s16, %s1763_s16 }
  0x2a   : > { %p1766_p0 = pnand %p1764_p13, %p2210_p8  ;;  %p1773_p7 = por %p1772_p5, %p1771_p4 }
  0x2c   : > { %p1767_p2 = pneg %p1766_p0 }
  0x2e   : > { %p1774_p9 = pnand %p1773_p7, %p1767_p2 }
  0x30   : > { %1777 = shalt.err (!%p1774_p9)
}
  0x31   : > { %s2636_s18 = smov 64   ;;  %s2086_s20 = smov 4  }
  0x32   : > { %1624 = dma.hbm_to_vmem [thread:$0]  (!%p2194_p6), %s2649_s2, 256, %s2187_s14, [#allocation6], %s2636_s18, %s2636_s18, %s2086_s20  }
  0x33   : > { %s2651_s3 = sld [smem:[#allocation26_spill]] }
  0x39   : > { %s1778_s26 = scalar_lea.hbm %s2651_s3, 16 }
  0x3a   : > { %p1779_p5 = scmp.ne.s32.totalorder %s2651_s3, %s1778_s26  ;;  %p1785_p12 = scmp.lt.u32.totalorder %s1778_s26, %s2651_s3 }
  0x3c   : > { %p1781_p10 = pnand %p1779_p5, %p2210_p8 }
  0x3e   : > { %p1782_p11 = pneg %p1781_p10 }
  0x40   : > { %p1787_p13 = pnand %p1785_p12, %p1782_p11 }
  0x42   : > { %1790 = shalt.err (!%p1787_p13)
}
  0x43   : > { %s1791_s14 = scalar_lea.vmem %s2198_s17, 16  ;;  %s1798_s21 = scalar_lea.vmem %s2198_s17, 32 }
  0x44   : > { %p1792_p0 = scmp.ne.s32.totalorder %s2198_s17, %s1791_s14  ;;  %p1799_p7 = scmp.lt.s32.totalorder %s2198_s17, %s2198_s17 }
  0x45   : > { %p1800_p9 = scmp.lt.s32.totalorder %s1798_s21, %s1791_s14 }
  0x46   : > { %p1794_p2 = pnand %p1792_p0, %p2210_p8 }
  0x47   : > { %p1801_p5 = por %p1800_p9, %p1799_p7 }
  0x48   : > { %p1795_p4 = pneg %p1794_p2 }
  0x4a   : > { %p1802_p10 = pnand %p1801_p5, %p1795_p4 }
  0x4c   : > { %1805 = shalt.err (!%p1802_p10)
}
  0x4d   : > { %1627 = dma.hbm_to_vmem [thread:$0]  (!%p2194_p6), %s2651_s3, 16, %s2198_s17, [#allocation9]  }
  0x4e   : > { %s2652_s5 = sld [smem:[#allocation28_spill]] }
  0x54   : > { %s1806_s24 = scalar_lea.hbm %s2652_s5, 16 }
  0x55   : > { %p1807_p11 = scmp.ne.s32.totalorder %s2652_s5, %s1806_s24  ;;  %p1813_p0 = scmp.lt.u32.totalorder %s1806_s24, %s2652_s5 }
  0x57   : > { %p1809_p12 = pnand %p1807_p11, %p2210_p8 }
  0x59   : > { %p1810_p13 = pneg %p1809_p12 }
  0x5b   : > { %p1815_p2 = pnand %p1813_p0, %p1810_p13 }
  0x5d   : > { %1818 = shalt.err (!%p1815_p2)
}
  0x5e   : > { %s1819_s21 = scalar_lea.vmem %s306_s19, 16  ;;  %s1826_s17 = scalar_lea.vmem %s306_s19, 32 }
  0x5f   : > { %p1820_p4 = scmp.ne.s32.totalorder %s306_s19, %s1819_s21  ;;  %p1827_p5 = scmp.lt.s32.totalorder %s306_s19, %s306_s19 }
  0x60   : > { %p1828_p10 = scmp.lt.s32.totalorder %s1826_s17, %s1819_s21 }
  0x61   : > { %p1822_p7 = pnand %p1820_p4, %p2210_p8 }
  0x62   : > { %p1829_p1 = por %p1828_p10, %p1827_p5 }
  0x63   : > { %p1823_p9 = pneg %p1822_p7 }
  0x65   : > { %p1830_p3 = pnand %p1829_p1, %p1823_p9 }
  0x67   : > { %1833 = shalt.err (!%p1830_p3)
}
  0x68   : > { %1633 = dma.hbm_to_vmem [thread:$0]  (!%p2194_p6), %s2652_s5, 16, %s306_s19, [#allocation12]  }
  0x69   : > { %s2087_s22 = smov [#allocation10]   ;;  %s2088_s24 = smov [#allocation13]  }
  0x6a   : > { %s291_s23 = sshll.u32 %s2087_s22, 4  ;;  %s315_s26 = sshll.u32 %s2088_s24, 4  ;;  %s292_s23 = int_to_ptr.vmem [resolvable:$true] %s291_s23  ;;  %s316_s26 = int_to_ptr.vmem [resolvable:$true] %s315_s26 }
  0x6b   : > { %s2653_s4 = sld [smem:[#allocation27_spill]] }
  0x71   : > { %s1834_s14 = scalar_lea.hbm %s2653_s4, 256 }
  0x72   : > { %p1835_p1 = scmp.ne.s32.totalorder %s2653_s4, %s1834_s14  ;;  %p1841_p12 = scmp.lt.u32.totalorder %s1834_s14, %s2653_s4 }
  0x74   : > { %p1837_p3 = pnand %p1835_p1, %p2210_p8 }
  0x76   : > { %p1838_p11 = pneg %p1837_p3 }
  0x78   : > { %p1843_p13 = pnand %p1841_p12, %p1838_p11 }
  0x7a   : > { %1846 = shalt.err (!%p1843_p13)
}
  0x7b   : > { %s1847_s19 = scalar_lea.vmem %s292_s23, 256  ;;  %p1855_p7 = scmp.lt.s32.totalorder %s292_s23, %s292_s23 }
  0x7c   : > { %p1848_p0 = scmp.ne.s32.totalorder %s292_s23, %s1847_s19  ;;  %p1856_p9 = scmp.lt.s32.totalorder %s1847_s19, %s1847_s19 }
  0x7e   : > { %p1850_p2 = pnand %p1848_p0, %p2210_p8  ;;  %p1857_p5 = por %p1856_p9, %p1855_p7 }
  0x80   : > { %p1851_p4 = pneg %p1850_p2 }
  0x82   : > { %p1858_p10 = pnand %p1857_p5, %p1851_p4 }
  0x84   : > { %1861 = shalt.err (!%p1858_p10)
}
  0x85   : > { %s2654_s30 = smov 64   ;;  %s2655_s6 = sld [smem:[#allocation29_spill]] }
  0x86   : > { %1630 = dma.hbm_to_vmem [thread:$0]  (!%p2194_p6), %s2653_s4, 256, %s292_s23, [#allocation9], %s2654_s30, %s2654_s30, %s2086_s20  }
  0x8b   : > { %s1862_s16 = scalar_lea.hbm %s2655_s6, 256 }
  0x8c   : > { %p1863_p1 = scmp.ne.s32.totalorder %s2655_s6, %s1862_s16  ;;  %p1869_p12 = scmp.lt.u32.totalorder %s1862_s16, %s2655_s6 }
  0x8e   : > { %p1865_p3 = pnand %p1863_p1, %p2210_p8 }
  0x90   : > { %p1866_p11 = pneg %p1865_p3 }
  0x92   : > { %p1871_p13 = pnand %p1869_p12, %p1866_p11 }
  0x94   : > { %1874 = shalt.err (!%p1871_p13)
}
  0x95   : > { %s1875_s19 = scalar_lea.vmem %s316_s26, 256  ;;  %p1883_p7 = scmp.lt.s32.totalorder %s316_s26, %s316_s26 }
  0x96   : > { %p1876_p0 = scmp.ne.s32.totalorder %s316_s26, %s1875_s19  ;;  %p1884_p9 = scmp.lt.s32.totalorder %s1875_s19, %s1875_s19 }
  0x98   : > { %p1878_p2 = pnand %p1876_p0, %p2210_p8  ;;  %p1885_p5 = por %p1884_p9, %p1883_p7 }
  0x9a   : > { %p1879_p4 = pneg %p1878_p2 }
  0x9c   : > { %p1886_p10 = pnand %p1885_p5, %p1879_p4 }
  0x9e   : > { %1889 = shalt.err (!%p1886_p10)
}
  0x9f   : > { %1636 = dma.hbm_to_vmem [thread:$0]  (!%p2194_p6), %s2655_s6, 256, %s316_s26, [#allocation12], %s2654_s30, %s2654_s30, %s2086_s20  }
  0xa0   : > { %s2089_s22 = smov [#allocation14]   ;;  %s1890_s14 = scalar_lea.hbm %s2631_s7, 16 }
  0xa1   : > { %s329_s24 = sshll.u32 %s2089_s22, 4  ;;  %p1891_p1 = scmp.ne.s32.totalorder %s2631_s7, %s1890_s14  ;;  %s330_s24 = int_to_ptr.vmem [resolvable:$true] %s329_s24 }
  0xa2   : > { %p1897_p12 = scmp.lt.u32.totalorder %s1890_s14, %s2631_s7 }
  0xa3   : > { %p1893_p3 = pnand %p1891_p1, %p2210_p8 }
  0xa5   : > { %p1894_p11 = pneg %p1893_p3 }
  0xa7   : > { %p1899_p13 = pnand %p1897_p12, %p1894_p11 }
  0xa9   : > { %1902 = shalt.err (!%p1899_p13)
}
  0xaa   : > { %s1903_s20 = scalar_lea.vmem %s330_s24, 16  ;;  %s1910_s26 = scalar_lea.vmem %s330_s24, 32 }
  0xab   : > { %p1904_p0 = scmp.ne.s32.totalorder %s330_s24, %s1903_s20  ;;  %p1911_p7 = scmp.lt.s32.totalorder %s330_s24, %s330_s24 }
  0xac   : > { %p1912_p9 = scmp.lt.s32.totalorder %s1910_s26, %s1903_s20 }
  0xad   : > { %p1906_p2 = pnand %p1904_p0, %p2210_p8 }
  0xae   : > { %p1913_p5 = por %p1912_p9, %p1911_p7 }
  0xaf   : > { %p1907_p4 = pneg %p1906_p2 }
  0xb1   : > { %p1914_p10 = pnand %p1913_p5, %p1907_p4 }
  0xb3   : > { %1917 = shalt.err (!%p1914_p10)
}
  0xb4   : > { %1639 = dma.hbm_to_vmem [thread:$0]  (!%p2194_p6), %s2631_s7, 16, %s330_s24, [#allocation15]  }
  0xb5   : > { %s1425_s25 = sadd.s32 4294967294, %s2080_s10   ;;  %s42_s18 = sadd.s32 1, %s2076_s9 }
  0xb6   : > { %p44_p8 = scmp.ge.s32.totalorder %s42_s18, 2  ;;  %s51_s15 = sadd.s32 1, %s2068_s29 }
  0xb7   : > { %p58_p1 = scmp.ne.s32.totalorder %s2068_s29, %s2064_s28  ;;  %p59_p3 = scmp.eq.s32.totalorder %s2080_s10, 0 }
  0xb8   : > { %s2683_s18 = smov (%p44_p8, %s42_s18), 0  ;;  %p64_p12 = scmp.ne.s32.totalorder %s2064_s28, %s2060_s27 }
  0xb9   : > { %p2345_p11 = por %p59_p3, %p58_p1  ;;  %s46_s24 = ssub.s32 %s2076_s9, %s2683_s18 }
  0xba   : > { %p242_p6 = scmp.eq.s32.totalorder %s2178_s11, 1  ;;  %p49_p13 = scmp.eq.s32.totalorder %s46_s24, 0 }
  0xbb   : > { %p2657_p0 = scmp.eq.s32.totalorder %s2178_s11, 0  ;;  %p248_p7 = scmp.eq.s32.totalorder %s1425_s25, 1 }
  0xbc   : > { %p2360_p4 = por %p242_p6, %p58_p1  ;;  %p1657_p5 = scmp.lt.s32.totalorder %s2080_s10, 2 }
  0xbd   : > { %p2356_p2 = por %p2657_p0, %p64_p12  ;;  %p2367_p9 = por %p248_p7, %p64_p12 }
  0xbe   : > { %s2659_s16 = scalar_select %p2360_p4, 1, 0 }
  0xbf   : > { %s2658_s13 = scalar_select %p2356_p2, 1, 0 }
  0xc0   : > { %s2365_s14 = scalar_select %p49_p13, %s2068_s29, %s51_s15  }
  0xc1   : > { %s2660_s21 = scalar_select %p2367_p9, 1, 0 }
  0xc2   : > { %s340_s17 = sand.u32 1, %s2068_s29   ;;  %s1435_s8 = sshll.u32 %s2076_s9, 6 }
  0xc3   : > { %s2374_s19 = sshll.u32 %s340_s17, 2  ;;  %s2379_s30 = scalar_lea.hbm %s2624_s0, %s1435_s8 }
  0xc4   : > { %s344_s23 = scalar_lea.vmem [#allocation2], %s2374_s19  ;;  %p2384_p10 = pnand %p1657_p5, %p2345_p11 }
  0xc5   : > { %s352_s25 = sshll.u32 %s344_s23, 4  ;;  %s2393_s26 = scalar_lea.hbm %s2625_s1, %s1435_s8  ;;  %s2388_s25 = int_to_ptr.vmem [resolvable:$true] %s352_s25 }
  0xc6   : > { %s341_s2 = scalar_lea.sflag [#allocation3], %s340_s17  ;;  %s1918_s3 = scalar_lea.hbm %s2379_s30, 64 }
  0xc7   : > { %p1919_p8 = scmp.ne.s32.totalorder %s2379_s30, %s1918_s3  ;;  %p1920_p1 = pneg %p2384_p10 }
  0xc8   : > { %s1923_s4 = scalar_lea.hbm %s2624_s0, 128  ;;  %p1924_p12 = scmp.lt.u32.totalorder %s2379_s30, %s2624_s0 }
  0xc9   : > { %p1921_p3 = pnand %p1920_p1, %p1919_p8  ;;  %p1925_p6 = scmp.lt.u32.totalorder %s1923_s4, %s1918_s3 }
  0xca   : > { %p1927_p0 = scmp.lt.u32.totalorder %s1918_s3, %s2379_s30 }
  0xcb   : > { %p1922_p11 = pneg %p1921_p3  ;;  %p1926_p13 = por %p1925_p6, %p1924_p12 }
  0xcd   : > { %p1928_p7 = por %p1927_p0, %p1926_p13 }
  0xcf   : > { %p1929_p5 = pnand %p1928_p7, %p1922_p11 }
  0xd1   : > { %1932 = shalt.err (!%p1929_p5)
}
  0xd2   : > { %s1933_s17 = scalar_lea.vmem %s2388_s25, 64  ;;  %s2090_s8 = smov [#allocation2]  }
  0xd3   : > { %p1934_p8 = scmp.ne.s32.totalorder %s2388_s25, %s1933_s17  ;;  %s1938_s24 = sshll.u32 %s2090_s8, 4  ;;  %s1939_s24 = int_to_ptr.vmem [resolvable:$false] %s1938_s24 }
  0xd4   : > { %s1940_s5 = scalar_lea.vmem %s1939_s24, 128  ;;  %p1941_p4 = scmp.lt.s32.totalorder %s2388_s25, %s1939_s24 }
  0xd5   : > { %p1936_p3 = pnand %p1934_p8, %p1920_p1  ;;  %p1942_p12 = scmp.lt.s32.totalorder %s1940_s5, %s1933_s17 }
  0xd7   : > { %p1937_p9 = pneg %p1936_p3  ;;  %p1943_p6 = por %p1942_p12, %p1941_p4 }
  0xd9   : > { %p1944_p13 = pnand %p1943_p6, %p1937_p9 }
  0xdb   : > { %1947 = shalt.err (!%p1944_p13)
}
  0xdc   : > { %1643 = dma.hbm_to_vmem [thread:$0]  (!%p2384_p10), %s2379_s30, 64, %s2388_s25, %s341_s2  }
  0xdd   : > { %s359_s3 = sand.u32 1, %s2080_s10   ;;  %s363_s4 = scalar_lea.vmem [#allocation5], %s2374_s19 }
  0xde   : > { %s370_s6 = sshll.u32 %s363_s4, 4  ;;  %s360_s20 = scalar_lea.sflag [#allocation6], %s359_s3  ;;  %s371_s6 = int_to_ptr.vmem [resolvable:$true] %s370_s6 }
  0xdf   : > { %s1948_s22 = scalar_lea.hbm %s2393_s26, 64  ;;  %s1953_s8 = scalar_lea.hbm %s2625_s1, 128 }
  0xe0   : > { %p1949_p4 = scmp.ne.s32.totalorder %s2393_s26, %s1948_s22  ;;  %p1954_p0 = scmp.lt.u32.totalorder %s2393_s26, %s2625_s1 }
  0xe1   : > { %p1955_p7 = scmp.lt.u32.totalorder %s1953_s8, %s1948_s22  ;;  %p1957_p8 = scmp.lt.u32.totalorder %s1948_s22, %s2393_s26 }
  0xe2   : > { %p1951_p9 = pnand %p1949_p4, %p1920_p1 }
  0xe3   : > { %p1956_p5 = por %p1955_p7, %p1954_p0 }
  0xe4   : > { %p1952_p11 = pneg %p1951_p9 }
  0xe5   : > { %p1958_p3 = por %p1957_p8, %p1956_p5 }
  0xe7   : > { %p1959_p12 = pnand %p1958_p3, %p1952_p11 }
  0xe9   : > { %1962 = shalt.err (!%p1959_p12)
}
  0xea   : > { %s1963_s2 = scalar_lea.vmem %s371_s6, 64  ;;  %s2091_s19 = smov [#allocation5]  }
  0xeb   : > { %p1964_p6 = scmp.ne.s32.totalorder %s371_s6, %s1963_s2  ;;  %s1968_s30 = sshll.u32 %s2091_s19, 4  ;;  %s1969_s30 = int_to_ptr.vmem [resolvable:$false] %s1968_s30 }
  0xec   : > { %s1970_s25 = scalar_lea.vmem %s1969_s30, 128  ;;  %p1971_p9 = scmp.lt.s32.totalorder %s371_s6, %s1969_s30 }
  0xed   : > { %p1966_p13 = pnand %p1964_p6, %p1920_p1  ;;  %p1972_p2 = scmp.lt.s32.totalorder %s1970_s25, %s1963_s2 }
  0xef   : > { %p1967_p4 = pneg %p1966_p13  ;;  %p1973_p0 = por %p1972_p2, %p1971_p9 }
  0xf1   : > { %p1974_p7 = pnand %p1973_p0, %p1967_p4 }
  0xf3   : > { %1977 = shalt.err (!%p1974_p7)
}
  0xf4   : > { %1646 = dma.hbm_to_vmem [thread:$0]  (!%p2384_p10), %s2393_s26, 64, %s371_s6, %s360_s20  }
  0xf5   : > { %p2662_p11 = scmp.ne.s32.totalorder %s2647_s12, 0 }
  0xf6   : > { %s2444_s3 = sand.u32 (!%p2662_p11), 1, %s2064_s28   ;;  %p2663_p2 = scmp.ne.s32.totalorder (!%p2662_p11), %s2658_s13, 0 }
  0xf7   : > { %379 = sbr.rel (%p2662_p11) target bundleno = 2414 (0x96e), region = 52  ;;  %s1439_s4 = sshll.u32 (!%p2662_p11), %s2444_s3, 2 }
  0xf8   : > { %s382_s22 = scalar_lea.sflag (!%p2662_p11), [#allocation3], %s2444_s3  ;;  %s2448_s23 = scalar_lea.vmem (!%p2662_p11), [#allocation2], %s1439_s4 }
  0xfe   : > { %2031 = dma.done.wait (%p2663_p2), %s382_s22, 64  }
  0xff   : > { %2033 = vsyncadd (%p2663_p2), %s382_s22, 4294967232  ;;  %s390_s15 = sand.u32 1, %s2178_s11   ;;  %s394_s26 = scalar_lea.vmem [#allocation5], %s1439_s4 }
 0x100   : > { %s391_s12 = scalar_lea.sflag [#allocation6], %s390_s15 }
 0x101   : > { %2035 = dma.done.wait (%p2663_p2), %s391_s12, 64  }
 0x102   : > { %2037 = vsyncadd (%p2663_p2), %s391_s12, 4294967232  ;;  %p2664_p10 = scmp.eq.s32.totalorder %s2178_s11, 0 }
 0x104   : > { %2039 = dma.done.wait (%p2664_p10), [#allocation6], 256   ;;  %p2665_p1 = pmov %p2664_p10 }
 0x106   : > { %2041 = vsyncadd (%p2665_p1), [#allocation6], 4294967040  ;;  %p2666_p5 = pmov %p2665_p1 }
 0x107   : > { %p2667_p8 = pmov %p2665_p1 }
 0x108   : > { %2043 = dma.done.wait (%p2666_p5), [#allocation9], 272  }
 0x109   : > { %2045 = vsyncadd (%p2667_p8), [#allocation9], 4294967024  ;;  %p2668_p3 = pmov %p2665_p1 }
 0x10a   : > { %p2669_p12 = pmov %p2665_p1 }
 0x10b   : > { %2047 = dma.done.wait (%p2668_p3), [#allocation12], 272  }
 0x10c   : > { %2049 = vsyncadd (%p2669_p12), [#allocation12], 4294967024  ;;  %p2670_p6 = pmov %p2665_p1 }
 0x10d   : > { %p2671_p13 = pmov %p2665_p1 }
 0x10e   : > { %2051 = dma.done.wait (%p2670_p6), [#allocation15], 16  }
 0x10f   : > { %2053 = vsyncadd (%p2671_p13), [#allocation15], 4294967280  ;;  %v2092_v0 = vmov 0.0   ;;  %vm2093_vm0 = vmmov 0   ;;  %v1730_v1 = vld [vmem:[#allocation10] sm:$0xff]   ;;  %v1731_v2 = vld [vmem:[#allocation7] sm:$0xff]  }
 0x110   : > { %1511 = vmatprep.subr.bf16.mxu1 %v2092_v0  ;;  %1503 = vmatprep.subr.bf16.mxu0 %v2092_v0  ;;  %v1732_v3 = vld [vmem:[#allocation10 + $0x8] sm:$0xff]   ;;  %v1733_v4 = vld [vmem:[#allocation7 + $0x8] sm:$0xff]   ;;  %vm482_vm1 = vcmask 261120   ;;  %v457_v6 = vld [vmem:[%s2448_s23] sm:$0xf]  ;;  %vm598_vm2 = vcmask 64512  }
 0x111   : > { %1515 = vmatprep.mubr.msk.bf16.mxu1 %vm2093_vm0, %v2092_v0  ;;  %1507 = vmatprep.mubr.msk.bf16.mxu0 %vm2093_vm0, %v2092_v0  ;;  %v458_v5 = vld [vmem:[%s394_s26] sm:$0xf]  ;;  %v1452_v7 = vld [vmem:[#allocation11] ss:$0 sm:$0xff]  ;;  %v1448_v8 = vld [vmem:[#allocation8] ss:$0 sm:$0xff] }
 0x112   : > { %1512 = vmatpush3.bf16.msra.mxu1 %v1730_v1  ;;  %1504 = vmatpush3.bf16.msra.mxu0 %v1731_v2  ;;  %s2094_s11 = smov 120   ;;  %s2095_s13 = smov 96   ;;  %vm665_vm3 = vcmask 1043456   ;;  %v594_v48 = vld [vmem:[#allocation13] sm:$0xf] }
 0x113   : > { %1513 = vmatprep.subr.bf16.mxu1 %v2092_v0  ;;  %1505 = vmatprep.subr.bf16.mxu0 %v2092_v0  ;;  %s2096_s6 = smov 88   ;;  %s2097_s20 = smov 112   ;;  %v876_v52 = vsel %vm665_vm3, %v594_v48, 0  ;;  %v595_v53 = vld [vmem:[#allocation13 + $0x4] sm:$0xf] }
 0x114   : > { %s2098_s17 = smov 104   ;;  %s2099_s8 = smov 80   ;;  %v830_v54 = vsel %vm665_vm3, %v595_v53, 0 }
 0x115   : > { %s2100_s24 = smov 72   ;;  %s2672_s5 = sld [smem:[#allocation24_spill]] }
 0x116   : > { %1514 = vmatpush3.bf16.msra.mxu1 %v1732_v3  ;;  %1506 = vmatpush3.bf16.msra.mxu0 %v1733_v4  ;;  %s1447_s2 = sshll.u32 %s2444_s3, 3  ;;  %s2673_s23 = sld [smem:[#allocation30_spill]] }
 0x117   : > { %1525 = vmatprep.subr.bf16.mxu1 %v2092_v0  ;;  %1519 = vmatprep.subr.bf16.mxu0 %v2092_v0  ;;  %s455_s30 = scalar_lea.vmem [#allocation16], %s1447_s2  ;;  %s1250_s12 = scalar_lea.sflag [#allocation4], %s2444_s3 }
 0x118   : > { %s1264_s25 = sshll.u32 %s455_s30, 4  ;;  %p2674_p9 = scmp.ne.s32.totalorder %s2659_s16, 0  ;;  %s2576_s25 = int_to_ptr.vmem [resolvable:$true] %s1264_s25 }
 0x119   : > { %1516 = vmatmul.mubr.msk.bf16.vlgmr.msra.gmra.mrb[0].mxu1 %vm482_vm1, %v458_v5  ;;  %1508 = vmatmul.mubr.msk.bf16.vlgmr.msra.gmra.mrb[0].mxu0 %vm482_vm1, %v457_v6  ;;  %s1978_s26 = scalar_lea.vmem %s2576_s25, 128 }
 0x11a   : > { %1527 = vmatprep.mubr.msk.bf16.mxu1 %vm2093_vm0, %v2092_v0  ;;  %1521 = vmatprep.mubr.msk.bf16.mxu0 %vm2093_vm0, %v2092_v0  ;;  %p1979_p4 = scmp.ne.s32.totalorder %s2576_s25, %s1978_s26 }
 0x11b   : > { %s1470_s19 = sshll.u32 %s2672_s5, 7 }
 0x11c   : > { %s2574_s15 = scalar_lea.hbm %s2673_s23, %s1470_s19  ;;  %p1980_p0 = pnand %p1979_p4, %p2674_p9 }
 0x11e   : > { %p1981_p7 = pneg %p1980_p0 }
 0x1ec   : > { %v586_v9 = vpop.f32.mrb[0].mxu1  ;;  %v520_v12 = vpop.f32.mrb[0].mxu0 }
 0x1ed   : > { %v587_v10 = vadd.f32 %v1452_v7, %v586_v9  ;;  %v1517_v11 = vpop.f32.mrb[1].mxu1  ;;  %v521_v14 = vadd.f32 %v1448_v8, %v520_v12  ;;  %v1509_v15 = vpop.f32.mrb[1].mxu0 }
 0x1ee   : > { %v589_v13 = vpop.f32.mrb[2].mxu1  ;;  %v523_v18 = vpop.f32.mrb[2].mxu0 }
 0x1ef   : > { %v2492_v16 = vpack.c.bf16 %v587_v10, %v587_v10  ;;  %v1518_v17 = vpop.f32.mrb[3].mxu1  ;;  %v1510_v19 = vpop.f32.mrb[3].mxu0  ;;  %v592_v20 = vpack.c.bf16 %v521_v14, %v521_v14 }
 0x1f1   : > { %714 = vrot.lane.b32.xlu0 %v2492_v16, %s2094_s11  ;;  %v603_v21 = vsel %vm598_vm2, %v2492_v16, 0 }
 0x1f2   : > { %1520 = vmatpush3.bf16.xpose.msra.mxu0 %v603_v21 }
 0x1f3   : > { %1531 = vmatprep.subr.bf16.mxu0 %v2092_v0 }
 0x1f5   : > { %712 = vrot.lane.b32.xlu0 %v592_v20, %s2094_s11  ;;  %s2101_s11 = smov [#allocation16]  }
 0x1f9   : > { %660 = vrot.lane.b32.xlu0 %v2492_v16, %s2095_s13  ;;  %1522 = vmatmul.mubr.msk.bf16.vlgmr.msra.gmra.mrb[4].mxu0 %vm598_vm2, %v592_v20  ;;  %s1982_s13 = sshll.u32 %s2101_s11, 4  ;;  %s1983_s13 = int_to_ptr.vmem [resolvable:$false] %s1982_s13 }
 0x1fa   : > { %1533 = vmatprep.mubr.msk.bf16.mxu0 %vm2093_vm0, %v2092_v0  ;;  %p1985_p11 = scmp.lt.s32.totalorder %s2576_s25, %s1983_s13 }
 0x263   : > { %v715_v22 = vpop.permute.xlu0 %714 }
 0x264   : > { %v720_v23 = vsel %vm598_vm2, %v715_v22, 0 }
 0x265   : > { %1532 = vmatpush3.bf16.xpose.msra.mxu0 %v720_v23 }
 0x266   : > { %1543 = vmatprep.subr.bf16.mxu0 %v2092_v0 }
 0x267   : > { %v713_v24 = vpop.permute.xlu0 %712 }
 0x26b   : > { %v661_v25 = vpop.permute.xlu0 %660 }
 0x26c   : > { %v667_v26 = vsel %vm665_vm3, %v661_v25, 0  ;;  %1534 = vmatmul.mubr.msk.bf16.vlgmr.msra.gmra.mrb[8].mxu0 %vm598_vm2, %v713_v24 }
 0x26d   : > { %1526 = vmatpush3.bf16.msra.mxu1 %v667_v26  ;;  %1545 = vmatprep.mubr.msk.bf16.mxu0 %vm2093_vm0, %v2092_v0 }
 0x26e   : > { %1537 = vmatprep.subr.bf16.mxu1 %v2092_v0  ;;  %1544 = vmatpush3.bf16.msra.mxu0 %v830_v54 }
 0x26f   : > { %1555 = vmatprep.subr.bf16.mxu0 %v2092_v0 }
 0x2cc   : > { %v639_v27 = vpop.f32.mrb[4].mxu0 }
 0x2cd   : > { %v1523_v28 = vpop.f32.mrb[5].mxu0  ;;  %v645_v29 = vsel %vm598_vm2, %v639_v27, -inf }
 0x2ce   : > { %646 = vmax.xlane.f32.xlu1 %v645_v29  ;;  %v642_v30 = vpop.f32.mrb[6].mxu0 }
 0x2cf   : > { %v1524_v31 = vpop.f32.mrb[7].mxu0 }
 0x33f   : > { %v756_v32 = vpop.f32.mrb[8].mxu0 }
 0x340   : > { %v1535_v33 = vpop.f32.mrb[9].mxu0  ;;  %v762_v34 = vsel %vm598_vm2, %v756_v32, -inf }
 0x341   : > { %763 = vmax.xlane.f32.xlu1 %v762_v34  ;;  %v759_v35 = vpop.f32.mrb[10].mxu0 }
 0x342   : > { %v1536_v36 = vpop.f32.mrb[11].mxu0 }
 0x352   : > { %776 = vrot.lane.b32.xlu1 %v2492_v16, %s2096_s6  ;;  %s1984_s6 = scalar_lea.vmem %s1983_s13, 256 }
 0x353   : > { %p1986_p2 = scmp.lt.s32.totalorder %s1984_s6, %s1978_s26 }
 0x355   : > { %p1987_p10 = por %p1986_p2, %p1985_p11 }
 0x356   : > { %920 = vrot.lane.b32.xlu1 %v2492_v16, %s2097_s20 }
 0x357   : > { %p1988_p1 = pnand %p1987_p10, %p1981_p7 }
 0x35a   : > { %918 = vrot.lane.b32.xlu1 %v592_v20, %s2097_s20 }
 0x35b   : > { %v647_v37 = vpop.xlane.xlu1 %646 }
 0x35c   : > { %v648_v38 = vsub.f32 %v639_v27, %v647_v37 }
 0x35e   : > { %v649_v39 = vmul.f32 1.442695, %v648_v38 }
 0x360   : > { %1734 = vpow2.f32 %v649_v39 }
 0x36a   : > { %v1735_v40 = vpop.eup %1734 }
 0x36b   : > { %v658_v41 = vpack.c.bf16 %v1735_v40, %v1735_v40  ;;  %v651_v42 = vsel %vm598_vm2, %v1735_v40, 0.0 }
 0x36d   : > { %1528 = vmatmul.mubr.msk.bf16.vlgmr.msra.gmra.mrb[4].mxu1 %vm598_vm2, %v658_v41 }
 0x36e   : > { %1539 = vmatprep.mubr.msk.bf16.mxu1 %vm2093_vm0, %v2092_v0 }
 0x37e   : > { %652 = vadd.xlane.f32.xlu1 %v651_v42 }
 0x38f   : > { %1079 = vrot.lane.b32.xlu1 %v592_v20, %s2098_s17 }
 0x3ce   : > { %v764_v43 = vpop.xlane.xlu1 %763 }
 0x3cf   : > { %v765_v44 = vsub.f32 %v756_v32, %v764_v43  ;;  %v596_v43 = vld [vmem:[#allocation13 + $0x8] sm:$0xf] }
 0x3d1   : > { %v766_v45 = vmul.f32 1.442695, %v765_v44  ;;  %v1036_v44 = vsel %vm665_vm3, %v596_v43, 0 }
 0x3d2   : > { %v777_v46 = vpop.permute.xlu1 %776 }
 0x3d3   : > { %1736 = vpow2.f32 %v766_v45  ;;  %v782_v47 = vsel %vm665_vm3, %v777_v46, 0 }
 0x3d4   : > { %1538 = vmatpush3.bf16.msra.mxu1 %v782_v47 }
 0x3d5   : > { %1549 = vmatprep.subr.bf16.mxu1 %v2092_v0 }
 0x3d6   : > { %v921_v55 = vpop.permute.xlu1 %920 }
 0x3d7   : > { %v926_v19 = vsel %vm598_vm2, %v921_v55, 0 }
 0x3da   : > { %v919_v56 = vpop.permute.xlu1 %918 }
 0x3dd   : > { %v1737_v49 = vpop.eup %1736 }
 0x3de   : > { %v768_v50 = vsel %vm598_vm2, %v1737_v49, 0.0  ;;  %v775_v51 = vpack.c.bf16 %v1737_v49, %v1737_v49 }
 0x3df   : > { %769 = vadd.xlane.f32.xlu0 %v768_v50 }
 0x3e0   : > { %1540 = vmatmul.mubr.msk.bf16.vlgmr.msra.gmra.mrb[8].mxu1 %vm598_vm2, %v775_v51 }
 0x3e1   : > { %1550 = vmatpush3.bf16.msra.mxu1 %v876_v52  ;;  %1551 = vmatprep.mubr.msk.bf16.mxu1 %vm2093_vm0, %v2092_v0 }
 0x3e2   : > { %1561 = vmatprep.subr.bf16.mxu1 %v2092_v0 }
 0x3f5   : > { %982 = vrot.lane.b32.xlu0 %v2492_v16, %s2099_s8 }
 0x40b   : > { %v653_v57 = vpop.xlane.xlu1 %652 }
 0x40c   : > { %1738 = vrcp.f32 %v653_v57 }
 0x40f   : > { %v1080_v42 = vpop.permute.xlu1 %1079 }
 0x416   : > { %v1739_v58 = vpop.eup %1738 }
 0x417   : > { %v655_v59 = vmul.f32 %v1739_v58, %v653_v57 }
 0x419   : > { %v656_v60 = vsub.f32 2.0, %v655_v59 }
 0x41b   : > { %v657_v61 = vmul.f32 %v1739_v58, %v656_v60 }
 0x440   : > { %v703_v62 = vpop.f32.mrb[4].mxu1 }
 0x441   : > { %v709_v63 = vmul.f32 %v703_v62, %v657_v61  ;;  %v1529_v1 = vpop.f32.mrb[5].mxu1 }
 0x442   : > { %v706_v2 = vpop.f32.mrb[6].mxu1 }
 0x443   : > { %v710_v3 = vpack.c.bf16 %v709_v63, %v709_v63  ;;  %v1530_v4 = vpop.f32.mrb[7].mxu1 }
 0x445   : > { %1552 = vmatmul.mubr.msk.bf16.vlgmr.msra.gmra.mrb[12].mxu1 %vm598_vm2, %v710_v3 }
 0x446   : > { %1563 = vmatprep.mubr.msk.bf16.mxu1 %vm2093_vm0, %v2092_v0 }
 0x46c   : > { %v770_v5 = vpop.xlane.xlu0 %769 }
 0x46d   : > { %1740 = vrcp.f32 %v770_v5 }
 0x470   : > { %v983_v6 = vpop.permute.xlu0 %982 }
 0x471   : > { %v988_v7 = vsel %vm665_vm3, %v983_v6, 0 }
 0x472   : > { %1562 = vmatpush3.bf16.msra.mxu1 %v988_v7 }
 0x473   : > { %1573 = vmatprep.subr.bf16.mxu1 %v2092_v0 }
 0x477   : > { %v1741_v8 = vpop.eup %1740 }
 0x478   : > { %v772_v9 = vmul.f32 %v1741_v8, %v770_v5  ;;  %v597_v5 = vld [vmem:[#allocation13 + $0xc] sm:$0xf] }
 0x47a   : > { %v773_v10 = vsub.f32 2.0, %v772_v9 }
 0x47c   : > { %v774_v11 = vmul.f32 %v1741_v8, %v773_v10 }
 0x4b3   : > { %v818_v12 = vpop.f32.mrb[8].mxu1 }
 0x4b4   : > { %v824_v13 = vmul.f32 %v818_v12, %v774_v11  ;;  %v1541_v14 = vpop.f32.mrb[9].mxu1 }
 0x4b5   : > { %v821_v15 = vpop.f32.mrb[10].mxu1 }
 0x4b6   : > { %v825_v17 = vpack.c.bf16 %v824_v13, %v824_v13  ;;  %v1542_v18 = vpop.f32.mrb[11].mxu1 }
 0x4b8   : > { %1546 = vmatmul.mubr.msk.bf16.vlgmr.msra.gmra.mrb[12].mxu0 %vm598_vm2, %v825_v17 }
 0x4b9   : > { %1556 = vmatpush3.bf16.xpose.msra.mxu0 %v926_v19  ;;  %1557 = vmatprep.mubr.msk.bf16.mxu0 %vm2093_vm0, %v2092_v0 }
 0x4ba   : > { %1567 = vmatprep.subr.bf16.mxu0 %v2092_v0 }
 0x4c0   : > { %1558 = vmatmul.mubr.msk.bf16.vlgmr.msra.gmra.mrb[16].mxu0 %vm598_vm2, %v919_v56 }
 0x4c1   : > { %1569 = vmatprep.mubr.msk.bf16.mxu0 %vm2093_vm0, %v2092_v0  ;;  %1568 = vmatpush3.bf16.msra.mxu0 %v1036_v44 }
 0x4c2   : > { %1579 = vmatprep.subr.bf16.mxu0 %v2092_v0 }
 0x518   : > { %v912_v20 = vpop.f32.mrb[12].mxu1 }
 0x519   : > { %v1553_v21 = vpop.f32.mrb[13].mxu1 }
 0x51a   : > { %v915_v22 = vpop.f32.mrb[14].mxu1 }
 0x51b   : > { %v1554_v23 = vpop.f32.mrb[15].mxu1 }
 0x58b   : > { %v866_v24 = vpop.f32.mrb[12].mxu0 }
 0x58c   : > { %v2542_v25 = vadd.f32 %v912_v20, %v866_v24  ;;  %v1547_v26 = vpop.f32.mrb[13].mxu0  ;;  %v1468_v24 = vld [vmem:[#allocation14] ss:$0 sm:$0xff] }
 0x58d   : > { %v869_v27 = vpop.f32.mrb[14].mxu0 }
 0x58e   : > { %v1548_v28 = vpop.f32.mrb[15].mxu0 }
 0x593   : > { %v962_v29 = vpop.f32.mrb[16].mxu0 }
 0x594   : > { %v1559_v30 = vpop.f32.mrb[17].mxu0  ;;  %v968_v31 = vsel %vm598_vm2, %v962_v29, -inf }
 0x595   : > { %969 = vmax.xlane.f32.xlu0 %v968_v31  ;;  %v965_v32 = vpop.f32.mrb[18].mxu0 }
 0x596   : > { %v1560_v33 = vpop.f32.mrb[19].mxu0 }
 0x5ab   : > { %1081 = vrot.lane.b32.xlu0 %v2492_v16, %s2098_s17 }
 0x622   : > { %v970_v34 = vpop.xlane.xlu0 %969 }
 0x623   : > { %v971_v35 = vsub.f32 %v962_v29, %v970_v34 }
 0x625   : > { %v972_v36 = vmul.f32 1.442695, %v971_v35 }
 0x626   : > { %v1082_v38 = vpop.permute.xlu0 %1081 }
 0x627   : > { %1742 = vpow2.f32 %v972_v36  ;;  %v1087_v41 = vsel %vm598_vm2, %v1082_v38, 0 }
 0x631   : > { %v1743_v37 = vpop.eup %1742 }
 0x632   : > { %v974_v39 = vsel %vm598_vm2, %v1743_v37, 0.0  ;;  %v981_v40 = vpack.c.bf16 %v1743_v37, %v1743_v37 }
 0x633   : > { %975 = vadd.xlane.f32.xlu0 %v974_v39 }
 0x634   : > { %1564 = vmatmul.mubr.msk.bf16.vlgmr.msra.gmra.mrb[16].mxu1 %vm598_vm2, %v981_v40 }
 0x635   : > { %1574 = vmatpush3.bf16.xpose.msra.mxu1 %v1087_v41  ;;  %1575 = vmatprep.mubr.msk.bf16.mxu1 %vm2093_vm0, %v2092_v0 }
 0x636   : > { %1585 = vmatprep.subr.bf16.mxu1 %v2092_v0 }
 0x63c   : > { %1576 = vmatmul.mubr.msk.bf16.vlgmr.msra.gmra.mrb[20].mxu1 %vm598_vm2, %v1080_v42 }
 0x63d   : > { %1587 = vmatprep.mubr.msk.bf16.mxu1 %vm2093_vm0, %v2092_v0 }
 0x649   : > { %1143 = vrot.lane.b32.xlu0 %v2492_v16, %s2100_s24 }
 0x6c0   : > { %v976_v45 = vpop.xlane.xlu0 %975 }
 0x6c1   : > { %1744 = vrcp.f32 %v976_v45 }
 0x6c4   : > { %v1144_v53 = vpop.permute.xlu0 %1143 }
 0x6c5   : > { %v1149_v16 = vsel %vm665_vm3, %v1144_v53, 0 }
 0x6cb   : > { %v1745_v46 = vpop.eup %1744 }
 0x6cc   : > { %v978_v47 = vmul.f32 %v1745_v46, %v976_v45 }
 0x6ce   : > { %v979_v48 = vsub.f32 2.0, %v978_v47 }
 0x6d0   : > { %v980_v49 = vmul.f32 %v1745_v46, %v979_v48 }
 0x707   : > { %v1024_v50 = vpop.f32.mrb[16].mxu1 }
 0x708   : > { %v1030_v51 = vmul.f32 %v1024_v50, %v980_v49  ;;  %v1565_v52 = vpop.f32.mrb[17].mxu1 }
 0x709   : > { %v1027_v54 = vpop.f32.mrb[18].mxu1 }
 0x70a   : > { %v1031_v55 = vpack.c.bf16 %v1030_v51, %v1030_v51  ;;  %v1566_v56 = vpop.f32.mrb[19].mxu1 }
 0x70c   : > { %1570 = vmatmul.mubr.msk.bf16.vlgmr.msra.gmra.mrb[20].mxu0 %vm598_vm2, %v1031_v55 }
 0x70d   : > { %1580 = vmatpush3.bf16.msra.mxu0 %v1149_v16  ;;  %1581 = vmatprep.mubr.msk.bf16.mxu0 %vm2093_vm0, %v2092_v0  ;;  %v1197_v0 = vsel %vm665_vm3, %v597_v5, 0 }
 0x70e   : > { %1586 = vmatpush3.bf16.msra.mxu1 %v1197_v0 }
 0x70f   : > { %v1123_v57 = vpop.f32.mrb[20].mxu1 }
 0x710   : > { %v1577_v58 = vpop.f32.mrb[21].mxu1  ;;  %v1129_v59 = vsel %vm598_vm2, %v1123_v57, -inf }
 0x711   : > { %1130 = vmax.xlane.f32.xlu1 %v1129_v59  ;;  %v1126_v60 = vpop.f32.mrb[22].mxu1 }
 0x712   : > { %v1578_v61 = vpop.f32.mrb[23].mxu1 }
 0x79e   : > { %v1131_v62 = vpop.xlane.xlu1 %1130 }
 0x79f   : > { %v1132_v63 = vsub.f32 %v1123_v57, %v1131_v62 }
 0x7a1   : > { %v1133_v1 = vmul.f32 1.442695, %v1132_v63 }
 0x7a3   : > { %1746 = vpow2.f32 %v1133_v1 }
 0x7ad   : > { %v1747_v2 = vpop.eup %1746 }
 0x7ae   : > { %v1135_v3 = vsel %vm598_vm2, %v1747_v2, 0.0  ;;  %v1142_v4 = vpack.c.bf16 %v1747_v2, %v1747_v2 }
 0x7af   : > { %1136 = vadd.xlane.f32.xlu1 %v1135_v3 }
 0x7b0   : > { %1582 = vmatmul.mubr.msk.bf16.vlgmr.msra.gmra.mrb[24].mxu0 %vm598_vm2, %v1142_v4 }
 0x7df   : > { %v1072_v6 = vpop.f32.mrb[20].mxu0 }
 0x7e0   : > { %v1078_v7 = vadd.f32 %v1072_v6, %v2542_v25  ;;  %v1571_v8 = vpop.f32.mrb[21].mxu0 }
 0x7e1   : > { %v1075_v9 = vpop.f32.mrb[22].mxu0 }
 0x7e2   : > { %v1572_v10 = vpop.f32.mrb[23].mxu0 }
 0x83c   : > { %v1137_v11 = vpop.xlane.xlu1 %1136 }
 0x83d   : > { %1748 = vrcp.f32 %v1137_v11 }
 0x847   : > { %v1749_v12 = vpop.eup %1748 }
 0x848   : > { %v1139_v13 = vmul.f32 %v1749_v12, %v1137_v11 }
 0x84a   : > { %v1140_v14 = vsub.f32 2.0, %v1139_v13 }
 0x84c   : > { %v1141_v15 = vmul.f32 %v1749_v12, %v1140_v14 }
 0x883   : > { %v1185_v17 = vpop.f32.mrb[24].mxu0 }
 0x884   : > { %v1191_v18 = vmul.f32 %v1185_v17, %v1141_v15  ;;  %v1583_v19 = vpop.f32.mrb[25].mxu0 }
 0x885   : > { %v1188_v20 = vpop.f32.mrb[26].mxu0 }
 0x886   : > { %v1192_v21 = vpack.c.bf16 %v1191_v18, %v1191_v18  ;;  %v1584_v22 = vpop.f32.mrb[27].mxu0 }
 0x888   : > { %1588 = vmatmul.mubr.msk.bf16.vlgmr.msra.gmra.mrb[24].mxu1 %vm598_vm2, %v1192_v21 }
 0x95b   : > { %v1233_v23 = vpop.f32.mrb[24].mxu1 }
 0x95c   : > { %v1239_v25 = vadd.f32 %v1233_v23, %v1078_v7  ;;  %v1589_v26 = vpop.f32.mrb[25].mxu1 }
 0x95d   : > { %v1236_v27 = vpop.f32.mrb[26].mxu1 }
 0x95e   : > { %v1247_v28 = vadd.f32 %v1468_v24, %v1239_v25  ;;  %v1590_v29 = vpop.f32.mrb[27].mxu1 }
 0x960   : > { %1248 = vst.msk [vmem:[%s455_s30] sm:$0xff] %vm482_vm1, %v1247_v28 }
 0x961   : > { %1991 = shalt.err (!%p1988_p1)
}
 0x962   : > { %s1992_s3 = scalar_lea.hbm %s2574_s15, 128  ;;  %s1996_s8 = scalar_lea.hbm %s2673_s23, 256 }
 0x963   : > { %p1993_p5 = scmp.ne.s32.totalorder %s2574_s15, %s1992_s3  ;;  %p1997_p12 = scmp.lt.u32.totalorder %s2574_s15, %s2673_s23 }
 0x964   : > { %p1998_p6 = scmp.lt.u32.totalorder %s1996_s8, %s1992_s3  ;;  %p2000_p4 = scmp.lt.u32.totalorder %s1992_s3, %s2574_s15 }
 0x965   : > { %p1994_p8 = pnand %p1993_p5, %p2674_p9 }
 0x966   : > { %p1999_p13 = por %p1998_p6, %p1997_p12 }
 0x967   : > { %p1995_p3 = pneg %p1994_p8 }
 0x968   : > { %p2001_p0 = por %p2000_p4, %p1999_p13 }
 0x96a   : > { %p2002_p7 = pnand %p2001_p0, %p1995_p3 }
 0x96c   : > { %2005 = shalt.err (!%p2002_p7)
}
 0x96d   : > { %1619 = dma.vmem_to_hbm [thread:$0]  (%p2674_p9), %s2576_s25, 128, %s2574_s15, %s1250_s12  }
 0x96e PF: > { %s1276_s2 = sand.u32 1, %s2060_s27   ;;  %p2675_p11 = scmp.ne.s32.totalorder %s2660_s21, 0 }
 0x96f   : > { %p2676_p2 = scmp.ge.s32.totalorder %s2080_s10, 2  ;;  %s1277_s19 = scalar_lea.sflag [#allocation4], %s1276_s2 }
 0x971   : > { %p1648_p10 = pnand %p2676_p2, %p2675_p11 }
 0x973   : > { %2055 = dma.done.wait (!%p1648_p10), %s1277_s19, 128  }
 0x974   : > { %2057 = vsyncadd (!%p1648_p10), %s1277_s19, 4294967168  ;;  %s30_s10 = sadd.s32 1, %s2080_s10   ;;  %s2677_s27 = smov %s2064_s28 }
 0x975   : > { %p27_p1 = scmp.ge.s32.totalorder %s30_s10, 4   ;;  %s2678_s28 = smov %s2068_s29 }
 0x976   : > { %s2679_s29 = smov %s2365_s14  ;;  %s2680_s30 = smov %s2076_s9 }
 0x977   : > { %s2681_s9 = smov %s2683_s18  ;;  %29 = sbr.rel (!%p27_p1) target bundleno = 18 (0x12), region = 134 }
 0x97e   :  { %1282 = vsyncpa [#allocation3], 1 }
 0x97f   :  { %1284 = vsyncpa [#allocation3 + $0x1], 1 }
 0x980   :  { %1285 = vsyncpa [#allocation6], 1 }
 0x981   :  { %1287 = vsyncpa [#allocation6 + $0x1], 1 }
 0x982   :  { %1288 = vsyncpa [#allocation9], 1 }
 0x983   :  { %1289 = vsyncpa [#allocation12], 1 }
 0x984   :  { %1290 = vsyncpa [#allocation15], 1 }
 0x985   :  { %1291 = vsyncpa [#allocation4], 1 }
 0x986   :  { %1293 = vsyncpa [#allocation4 + $0x1], 1 }

</bundles_post_ra>
